<compile_context>
chip_gen: v6e
topology: v6e:2x2x1
jax: 0.10.0
libtpu: 0.0.40
codegen_flags: <defaults>
</compile_context>

<pallas_src>
import functools

import jax
import jax.numpy as jnp
from jax.experimental import pallas as pl
from jax.experimental.pallas import tpu as pltpu


def lstm_kernel(x_ref, wih_ref, whh_ref, b_ref, out_ref, gx_scr,
                *, seq_len, batch):
    """x_ref: (T*B, D) bf16, wih_ref: (D, 4H) bf16, whh_ref: (H, 4H) bf16,
    b_ref: (1, 4H) f32, out_ref: (T*B, H) f32, gx_scr: VMEM (T*B, 4H) f32."""
    H = out_ref.shape[-1]

    # ---- Time-parallel pre-pass: input projection for ALL timesteps at once.
    # One bf16 MXU matmul with M = T*B (f32 accumulate), bias folded in here so
    # it is off the serial critical path.
    gx_scr[...] = (
        jnp.dot(x_ref[...], wih_ref[...], preferred_element_type=jnp.float32)
        + b_ref[...]
    )

    # Hoist the resident recurrent-weight load out of the loop.
    whh = whh_ref[...]                                   # (H, 4H) bf16

    # ---- Sequential recurrence over time, h/c carried in vregs.
    def step(t, carry):
        h_prev_bf, c_prev = carry                        # bf16 (B,H), f32 (B,H)
        row = pl.multiple_of(t * batch, batch)           # sublane-tile aligned

        # gates = gx[t] + h_{t-1} @ W_hh^T  -> (B, 4H) f32 (bf16 MXU inputs).
        gates = gx_scr[pl.ds(row, batch), :] + jnp.dot(
            h_prev_bf, whh, preferred_element_type=jnp.float32)

        # Full-vreg EUP activations on the whole (B, 4H == 128-lane) tile:
        # sigmoid(x) == 0.5 * tanh(0.5 * x) + 0.5  (no exp+recip lowering).
        sig_all = 0.5 * jnp.tanh(0.5 * gates) + 0.5
        tanh_all = jnp.tanh(gates)

        i_g = sig_all[:, 0 * H:1 * H]
        f_g = sig_all[:, 1 * H:2 * H]
        g_g = tanh_all[:, 2 * H:3 * H]
        o_g = sig_all[:, 3 * H:4 * H]

        c_new = f_g * c_prev + i_g * g_g                 # f32 VALU
        h_new = o_g * jnp.tanh(c_new)                    # f32

        # NOTE: H=32 < 128 lanes -> lane-masked store; negligible at this size.
        out_ref[pl.ds(row, batch), :] = h_new
        return h_new.astype(jnp.bfloat16), c_new

    h0 = jnp.zeros((batch, H), jnp.bfloat16)
    c0 = jnp.zeros((batch, H), jnp.float32)
    # Short fixed trip count -> full unroll; bounded unroll for long sequences
    # to avoid vreg-spill in the vld/vst slots.
    unroll = True if seq_len <= 16 else 8
    jax.lax.fori_loop(0, seq_len, step, (h0, c0), unroll=unroll)


def dplstm_forward(x, w_ih, w_hh, b_ih, b_hh):
    """x: (T, B, D) float32. Returns (T, B, H) float32."""
    T, B, D = x.shape
    H4 = w_ih.shape[0]
    H = H4 // 4

    # Pad batch to the f32 sublane tile so per-step slices stay aligned.
    B_pad = ((B + 7) // 8) * 8
    x_f32 = jnp.asarray(x, jnp.float32)
    if B_pad != B:
        x_f32 = jnp.pad(x_f32, ((0, 0), (0, B_pad - B), (0, 0)))

    # bf16 MXU operands, f32 bias (added after the f32-accumulated matmul).
    x2 = jnp.reshape(x_f32, (T * B_pad, D)).astype(jnp.bfloat16)   # (T*B, D)
    wih_t = jnp.asarray(w_ih.T, jnp.bfloat16)                      # (D, 4H)
    whh_t = jnp.asarray(w_hh.T, jnp.bfloat16)                      # (H, 4H)
    bias = jnp.asarray((b_ih + b_hh).reshape(1, H4), jnp.float32)

    kernel = functools.partial(lstm_kernel, seq_len=T, batch=B_pad)

    out2 = pl.pallas_call(
        kernel,
        out_shape=jax.ShapeDtypeStruct((T * B_pad, H), jnp.float32),
        grid_spec=pltpu.PrefetchScalarGridSpec(
            num_scalar_prefetch=0,
            grid=(1,),
            in_specs=[
                pl.BlockSpec((T * B_pad, D), lambda i: (0, 0)),  # x, flat T*B
                pl.BlockSpec((D, H4), lambda i: (0, 0)),         # W_ih^T
                pl.BlockSpec((H, H4), lambda i: (0, 0)),         # W_hh^T
                pl.BlockSpec((1, H4), lambda i: (0, 0)),         # combined bias
            ],
            out_specs=pl.BlockSpec((T * B_pad, H), lambda i: (0, 0)),
            scratch_shapes=[
                pltpu.VMEM((T * B_pad, H4), jnp.float32),  # gx = x@W_ih^T + b
            ],
        ),
        compiler_params=pltpu.CompilerParams(
            dimension_semantics=("arbitrary",),  # whole recurrence in one step
        ),
    )(x2, wih_t, whh_t, bias)

    out = out2.reshape(T, B_pad, H)
    if B_pad != B:
        out = out[:, :B, :]
    return out


def lstm_reference(x, w_ih, w_hh, b_ih, b_hh):
    """Pure-JAX reference matching PyTorch nn.LSTM / opacus DPLSTM math."""
    T, B, D = x.shape
    H = w_hh.shape[1]

    def step(carry, x_t):
        h, c = carry
        gates = x_t @ w_ih.T + h @ w_hh.T + b_ih + b_hh
        i_g = jax.nn.sigmoid(gates[:, 0 * H:1 * H])
        f_g = jax.nn.sigmoid(gates[:, 1 * H:2 * H])
        g_g = jnp.tanh(gates[:, 2 * H:3 * H])
        o_g = jax.nn.sigmoid(gates[:, 3 * H:4 * H])
        c_new = f_g * c + i_g * g_g
        h_new = o_g * jnp.tanh(c_new)
        return (h_new, c_new), h_new

    init = (jnp.zeros((B, H), jnp.float32), jnp.zeros((B, H), jnp.float32))
    _, out = jax.lax.scan(step, init, x)
    return out


if __name__ == "__main__":
    # Small shapes consistent with the module: DPLSTM(input_size=16, hidden_size=32)
    T, B, D, H = 8, 8, 16, 32

    key = jax.random.PRNGKey(0)
    k_x, k_wih, k_whh, k_bih, k_bhh = jax.random.split(key, 5)

    # PyTorch LSTM parameter init: U(-1/sqrt(H), 1/sqrt(H)), deterministic here.
    k = 1.0 / jnp.sqrt(jnp.float32(H))
    w_ih = jax.random.uniform(k_wih, (4 * H, D), jnp.float32, -k, k)
    w_hh = jax.random.uniform(k_whh, (4 * H, H), jnp.float32, -k, k)
    b_ih = jax.random.uniform(k_bih, (4 * H,), jnp.float32, -k, k)
    b_hh = jax.random.uniform(k_bhh, (4 * H,), jnp.float32, -k, k)

    x = jax.random.normal(k_x, (T, B, D), jnp.float32)

    out = dplstm_forward(x, w_ih, w_hh, b_ih, b_hh)
    out = jax.block_until_ready(out)

    ref = lstm_reference(x, w_ih, w_hh, b_ih, b_hh)
    assert out.shape == (T, B, H)
    # bf16 MXU inputs (f32 accumulate / f32 gate math) -> loosened tolerance.
    assert jnp.allclose(out, ref, atol=2e-2, rtol=2e-2), "mismatch vs reference"

    print("KERNEL_OK")
</pallas_src>

<mosaic_0001>
module attributes {stable_mosaic.version = 11 : i64} {
  func.func @lstm_kernel(%arg0: i32, %arg1: memref<64x16xbf16, #tpu.memory_space<vmem>>, %arg2: memref<16x128xbf16, #tpu.memory_space<vmem>>, %arg3: memref<32x128xbf16, #tpu.memory_space<vmem>>, %arg4: memref<1x128xf32, #tpu.memory_space<vmem>>, %arg5: memref<64x32xf32, #tpu.memory_space<vmem>>, %arg6: memref<64x128xf32, #tpu.memory_space<vmem>>) attributes {dimension_semantics = [#tpu.dimension_semantics<arbitrary>], iteration_bounds = array<i64: 1>, scalar_prefetch = 0 : i64, scratch_operands = 1 : i64, tpu.core_type = #tpu.core_type<tc>, window_params = [{pipeline_mode = #tpu.pipeline_mode<synchronous>, transform_indices = @transform_0, window_bounds = array<i64: 64, 16>}, {pipeline_mode = #tpu.pipeline_mode<synchronous>, transform_indices = @transform_1, window_bounds = array<i64: 16, 128>}, {pipeline_mode = #tpu.pipeline_mode<synchronous>, transform_indices = @transform_2, window_bounds = array<i64: 32, 128>}, {pipeline_mode = #tpu.pipeline_mode<synchronous>, transform_indices = @transform_3, window_bounds = array<i64: 1, 128>}, {pipeline_mode = #tpu.pipeline_mode<synchronous>, transform_indices = @transform_4, window_bounds = array<i64: 64, 32>}]} {
    %c0 = arith.constant 0 : index
    %c0_0 = arith.constant 0 : index
    %0 = vector.load %arg1[%c0, %c0_0] : memref<64x16xbf16, #tpu.memory_space<vmem>>, vector<64x16xbf16>
    %c0_1 = arith.constant 0 : index
    %c0_2 = arith.constant 0 : index
    %1 = vector.load %arg2[%c0_1, %c0_2] : memref<16x128xbf16, #tpu.memory_space<vmem>>, vector<16x128xbf16>
    %cst = arith.constant dense<0.000000e+00> : vector<64x128xf32>
    %2 = tpu.matmul %0, %1, %cst {dimension_numbers = #tpu.dot_dimension_numbers<[1], [0], [0], [1], [0, 0, 1, 1], [], []>} : vector<64x16xbf16>, vector<16x128xbf16>, vector<64x128xf32> -> vector<64x128xf32>
    %c0_3 = arith.constant 0 : index
    %c0_4 = arith.constant 0 : index
    %3 = vector.load %arg4[%c0_3, %c0_4] : memref<1x128xf32, #tpu.memory_space<vmem>>, vector<1x128xf32>
    %4 = vector.broadcast %3 : vector<1x128xf32> to vector<64x128xf32>
    %5 = arith.addf %2, %4 : vector<64x128xf32>
    %c0_5 = arith.constant 0 : index
    %c0_6 = arith.constant 0 : index
    %6 = vector.load %arg6[%c0_5, %c0_6] : memref<64x128xf32, #tpu.memory_space<vmem>>, vector<64x128xf32>
    tpu.vector_store %arg6[%c0_5, %c0_6], %5 {strides = array<i32>} : memref<64x128xf32, #tpu.memory_space<vmem>>, vector<64x128xf32>,
    %c0_7 = arith.constant 0 : index
    %c0_8 = arith.constant 0 : index
    %7 = vector.load %arg3[%c0_7, %c0_8] : memref<32x128xbf16, #tpu.memory_space<vmem>>, vector<32x128xbf16>
    %cst_9 = arith.constant 0.000000e+00 : bf16
    %8 = vector.broadcast %cst_9 : bf16 to vector<8x32xbf16>
    %cst_10 = arith.constant 0.000000e+00 : f32
    %9 = vector.broadcast %cst_10 : f32 to vector<8x32xf32>
    %c0_i32 = arith.constant 0 : i32
    %c8_i32 = arith.constant 8 : i32
    %10 = arith.muli %c0_i32, %c8_i32 : i32
    %11 = tpu.assume_multiple %10, 8 : i32
    %12 = arith.index_cast %11 : i32 to index
    %c0_11 = arith.constant 0 : index
    %13 = vector.load %arg6[%12, %c0_11] : memref<64x128xf32, #tpu.memory_space<vmem>>, vector<8x128xf32>
    %cst_12 = arith.constant dense<0.000000e+00> : vector<8x128xf32>
    %14 = tpu.matmul %8, %7, %cst_12 {dimension_numbers = #tpu.dot_dimension_numbers<[1], [0], [0], [1], [0, 0, 1, 1], [], []>} : vector<8x32xbf16>, vector<32x128xbf16>, vector<8x128xf32> -> vector<8x128xf32>
    %15 = arith.addf %13, %14 : vector<8x128xf32>
    %cst_13 = arith.constant 5.000000e-01 : f32
    %16 = vector.broadcast %cst_13 : f32 to vector<8x128xf32>
    %17 = arith.mulf %16, %15 : vector<8x128xf32>
    %18 = math.tanh %17 : vector<8x128xf32>
    %cst_14 = arith.constant 5.000000e-01 : f32
    %19 = vector.broadcast %cst_14 : f32 to vector<8x128xf32>
    %20 = arith.mulf %19, %18 : vector<8x128xf32>
    %cst_15 = arith.constant 5.000000e-01 : f32
    %21 = vector.broadcast %cst_15 : f32 to vector<8x128xf32>
    %22 = arith.addf %20, %21 : vector<8x128xf32>
    %23 = math.tanh %15 : vector<8x128xf32>
    %24 = vector.extract_strided_slice %22 {offsets = [0, 0], sizes = [8, 32], strides = [1, 1]} : vector<8x128xf32> to vector<8x32xf32>
    %25 = vector.extract_strided_slice %22 {offsets = [0, 32], sizes = [8, 32], strides = [1, 1]} : vector<8x128xf32> to vector<8x32xf32>
    %26 = vector.extract_strided_slice %23 {offsets = [0, 64], sizes = [8, 32], strides = [1, 1]} : vector<8x128xf32> to vector<8x32xf32>
    %27 = vector.extract_strided_slice %22 {offsets = [0, 96], sizes = [8, 32], strides = [1, 1]} : vector<8x128xf32> to vector<8x32xf32>
    %28 = arith.mulf %25, %9 : vector<8x32xf32>
    %29 = arith.mulf %24, %26 : vector<8x32xf32>
    %30 = arith.addf %28, %29 : vector<8x32xf32>
    %31 = math.tanh %30 : vector<8x32xf32>
    %32 = arith.mulf %27, %31 : vector<8x32xf32>
    %33 = arith.index_cast %11 : i32 to index
    %c0_16 = arith.constant 0 : index
    %34 = vector.load %arg5[%33, %c0_16] : memref<64x32xf32, #tpu.memory_space<vmem>>, vector<8x32xf32>
    tpu.vector_store %arg5[%33, %c0_16], %32 {strides = array<i32>} : memref<64x32xf32, #tpu.memory_space<vmem>>, vector<8x32xf32>,
    %35 = arith.truncf %32 : vector<8x32xf32> to vector<8x32xbf16>
    %c1_i32 = arith.constant 1 : i32
    %c8_i32_17 = arith.constant 8 : i32
    %36 = arith.muli %c1_i32, %c8_i32_17 : i32
    %37 = tpu.assume_multiple %36, 8 : i32
    %38 = arith.index_cast %37 : i32 to index
    %c0_18 = arith.constant 0 : index
    %39 = vector.load %arg6[%38, %c0_18] : memref<64x128xf32, #tpu.memory_space<vmem>>, vector<8x128xf32>
    %cst_19 = arith.constant dense<0.000000e+00> : vector<8x128xf32>
    %40 = tpu.matmul %35, %7, %cst_19 {dimension_numbers = #tpu.dot_dimension_numbers<[1], [0], [0], [1], [0, 0, 1, 1], [], []>} : vector<8x32xbf16>, vector<32x128xbf16>, vector<8x128xf32> -> vector<8x128xf32>
    %41 = arith.addf %39, %40 : vector<8x128xf32>
    %cst_20 = arith.constant 5.000000e-01 : f32
    %42 = vector.broadcast %cst_20 : f32 to vector<8x128xf32>
    %43 = arith.mulf %42, %41 : vector<8x128xf32>
    %44 = math.tanh %43 : vector<8x128xf32>
    %cst_21 = arith.constant 5.000000e-01 : f32
    %45 = vector.broadcast %cst_21 : f32 to vector<8x128xf32>
    %46 = arith.mulf %45, %44 : vector<8x128xf32>
    %cst_22 = arith.constant 5.000000e-01 : f32
    %47 = vector.broadcast %cst_22 : f32 to vector<8x128xf32>
    %48 = arith.addf %46, %47 : vector<8x128xf32>
    %49 = math.tanh %41 : vector<8x128xf32>
    %50 = vector.extract_strided_slice %48 {offsets = [0, 0], sizes = [8, 32], strides = [1, 1]} : vector<8x128xf32> to vector<8x32xf32>
    %51 = vector.extract_strided_slice %48 {offsets = [0, 32], sizes = [8, 32], strides = [1, 1]} : vector<8x128xf32> to vector<8x32xf32>
    %52 = vector.extract_strided_slice %49 {offsets = [0, 64], sizes = [8, 32], strides = [1, 1]} : vector<8x128xf32> to vector<8x32xf32>
    %53 = vector.extract_strided_slice %48 {offsets = [0, 96], sizes = [8, 32], strides = [1, 1]} : vector<8x128xf32> to vector<8x32xf32>
    %54 = arith.mulf %51, %30 : vector<8x32xf32>
    %55 = arith.mulf %50, %52 : vector<8x32xf32>
    %56 = arith.addf %54, %55 : vector<8x32xf32>
    %57 = math.tanh %56 : vector<8x32xf32>
    %58 = arith.mulf %53, %57 : vector<8x32xf32>
    %59 = arith.index_cast %37 : i32 to index
    %c0_23 = arith.constant 0 : index
    %60 = vector.load %arg5[%59, %c0_23] : memref<64x32xf32, #tpu.memory_space<vmem>>, vector<8x32xf32>
    tpu.vector_store %arg5[%59, %c0_23], %58 {strides = array<i32>} : memref<64x32xf32, #tpu.memory_space<vmem>>, vector<8x32xf32>,
    %61 = arith.truncf %58 : vector<8x32xf32> to vector<8x32xbf16>
    %c2_i32 = arith.constant 2 : i32
    %c8_i32_24 = arith.constant 8 : i32
    %62 = arith.muli %c2_i32, %c8_i32_24 : i32
    %63 = tpu.assume_multiple %62, 8 : i32
    %64 = arith.index_cast %63 : i32 to index
    %c0_25 = arith.constant 0 : index
    %65 = vector.load %arg6[%64, %c0_25] : memref<64x128xf32, #tpu.memory_space<vmem>>, vector<8x128xf32>
    %cst_26 = arith.constant dense<0.000000e+00> : vector<8x128xf32>
    %66 = tpu.matmul %61, %7, %cst_26 {dimension_numbers = #tpu.dot_dimension_numbers<[1], [0], [0], [1], [0, 0, 1, 1], [], []>} : vector<8x32xbf16>, vector<32x128xbf16>, vector<8x128xf32> -> vector<8x128xf32>
    %67 = arith.addf %65, %66 : vector<8x128xf32>
    %cst_27 = arith.constant 5.000000e-01 : f32
    %68 = vector.broadcast %cst_27 : f32 to vector<8x128xf32>
    %69 = arith.mulf %68, %67 : vector<8x128xf32>
    %70 = math.tanh %69 : vector<8x128xf32>
    %cst_28 = arith.constant 5.000000e-01 : f32
    %71 = vector.broadcast %cst_28 : f32 to vector<8x128xf32>
    %72 = arith.mulf %71, %70 : vector<8x128xf32>
    %cst_29 = arith.constant 5.000000e-01 : f32
    %73 = vector.broadcast %cst_29 : f32 to vector<8x128xf32>
    %74 = arith.addf %72, %73 : vector<8x128xf32>
    %75 = math.tanh %67 : vector<8x128xf32>
    %76 = vector.extract_strided_slice %74 {offsets = [0, 0], sizes = [8, 32], strides = [1, 1]} : vector<8x128xf32> to vector<8x32xf32>
    %77 = vector.extract_strided_slice %74 {offsets = [0, 32], sizes = [8, 32], strides = [1, 1]} : vector<8x128xf32> to vector<8x32xf32>
    %78 = vector.extract_strided_slice %75 {offsets = [0, 64], sizes = [8, 32], strides = [1, 1]} : vector<8x128xf32> to vector<8x32xf32>
    %79 = vector.extract_strided_slice %74 {offsets = [0, 96], sizes = [8, 32], strides = [1, 1]} : vector<8x128xf32> to vector<8x32xf32>
    %80 = arith.mulf %77, %56 : vector<8x32xf32>
    %81 = arith.mulf %76, %78 : vector<8x32xf32>
    %82 = arith.addf %80, %81 : vector<8x32xf32>
    %83 = math.tanh %82 : vector<8x32xf32>
    %84 = arith.mulf %79, %83 : vector<8x32xf32>
    %85 = arith.index_cast %63 : i32 to index
    %c0_30 = arith.constant 0 : index
    %86 = vector.load %arg5[%85, %c0_30] : memref<64x32xf32, #tpu.memory_space<vmem>>, vector<8x32xf32>
    tpu.vector_store %arg5[%85, %c0_30], %84 {strides = array<i32>} : memref<64x32xf32, #tpu.memory_space<vmem>>, vector<8x32xf32>,
    %87 = arith.truncf %84 : vector<8x32xf32> to vector<8x32xbf16>
    %c3_i32 = arith.constant 3 : i32
    %c8_i32_31 = arith.constant 8 : i32
    %88 = arith.muli %c3_i32, %c8_i32_31 : i32
    %89 = tpu.assume_multiple %88, 8 : i32
    %90 = arith.index_cast %89 : i32 to index
    %c0_32 = arith.constant 0 : index
    %91 = vector.load %arg6[%90, %c0_32] : memref<64x128xf32, #tpu.memory_space<vmem>>, vector<8x128xf32>
    %cst_33 = arith.constant dense<0.000000e+00> : vector<8x128xf32>
    %92 = tpu.matmul %87, %7, %cst_33 {dimension_numbers = #tpu.dot_dimension_numbers<[1], [0], [0], [1], [0, 0, 1, 1], [], []>} : vector<8x32xbf16>, vector<32x128xbf16>, vector<8x128xf32> -> vector<8x128xf32>
    %93 = arith.addf %91, %92 : vector<8x128xf32>
    %cst_34 = arith.constant 5.000000e-01 : f32
    %94 = vector.broadcast %cst_34 : f32 to vector<8x128xf32>
    %95 = arith.mulf %94, %93 : vector<8x128xf32>
    %96 = math.tanh %95 : vector<8x128xf32>
    %cst_35 = arith.constant 5.000000e-01 : f32
    %97 = vector.broadcast %cst_35 : f32 to vector<8x128xf32>
    %98 = arith.mulf %97, %96 : vector<8x128xf32>
    %cst_36 = arith.constant 5.000000e-01 : f32
    %99 = vector.broadcast %cst_36 : f32 to vector<8x128xf32>
    %100 = arith.addf %98, %99 : vector<8x128xf32>
    %101 = math.tanh %93 : vector<8x128xf32>
    %102 = vector.extract_strided_slice %100 {offsets = [0, 0], sizes = [8, 32], strides = [1, 1]} : vector<8x128xf32> to vector<8x32xf32>
    %103 = vector.extract_strided_slice %100 {offsets = [0, 32], sizes = [8, 32], strides = [1, 1]} : vector<8x128xf32> to vector<8x32xf32>
    %104 = vector.extract_strided_slice %101 {offsets = [0, 64], sizes = [8, 32], strides = [1, 1]} : vector<8x128xf32> to vector<8x32xf32>
    %105 = vector.extract_strided_slice %100 {offsets = [0, 96], sizes = [8, 32], strides = [1, 1]} : vector<8x128xf32> to vector<8x32xf32>
    %106 = arith.mulf %103, %82 : vector<8x32xf32>
    %107 = arith.mulf %102, %104 : vector<8x32xf32>
    %108 = arith.addf %106, %107 : vector<8x32xf32>
    %109 = math.tanh %108 : vector<8x32xf32>
    %110 = arith.mulf %105, %109 : vector<8x32xf32>
    %111 = arith.index_cast %89 : i32 to index
    %c0_37 = arith.constant 0 : index
    %112 = vector.load %arg5[%111, %c0_37] : memref<64x32xf32, #tpu.memory_space<vmem>>, vector<8x32xf32>
    tpu.vector_store %arg5[%111, %c0_37], %110 {strides = array<i32>} : memref<64x32xf32, #tpu.memory_space<vmem>>, vector<8x32xf32>,
    %113 = arith.truncf %110 : vector<8x32xf32> to vector<8x32xbf16>
    %c4_i32 = arith.constant 4 : i32
    %c8_i32_38 = arith.constant 8 : i32
    %114 = arith.muli %c4_i32, %c8_i32_38 : i32
    %115 = tpu.assume_multiple %114, 8 : i32
    %116 = arith.index_cast %115 : i32 to index
    %c0_39 = arith.constant 0 : index
    %117 = vector.load %arg6[%116, %c0_39] : memref<64x128xf32, #tpu.memory_space<vmem>>, vector<8x128xf32>
    %cst_40 = arith.constant dense<0.000000e+00> : vector<8x128xf32>
    %118 = tpu.matmul %113, %7, %cst_40 {dimension_numbers = #tpu.dot_dimension_numbers<[1], [0], [0], [1], [0, 0, 1, 1], [], []>} : vector<8x32xbf16>, vector<32x128xbf16>, vector<8x128xf32> -> vector<8x128xf32>
    %119 = arith.addf %117, %118 : vector<8x128xf32>
    %cst_41 = arith.constant 5.000000e-01 : f32
    %120 = vector.broadcast %cst_41 : f32 to vector<8x128xf32>
    %121 = arith.mulf %120, %119 : vector<8x128xf32>
    %122 = math.tanh %121 : vector<8x128xf32>
    %cst_42 = arith.constant 5.000000e-01 : f32
    %123 = vector.broadcast %cst_42 : f32 to vector<8x128xf32>
    %124 = arith.mulf %123, %122 : vector<8x128xf32>
    %cst_43 = arith.constant 5.000000e-01 : f32
    %125 = vector.broadcast %cst_43 : f32 to vector<8x128xf32>
    %126 = arith.addf %124, %125 : vector<8x128xf32>
    %127 = math.tanh %119 : vector<8x128xf32>
    %128 = vector.extract_strided_slice %126 {offsets = [0, 0], sizes = [8, 32], strides = [1, 1]} : vector<8x128xf32> to vector<8x32xf32>
    %129 = vector.extract_strided_slice %126 {offsets = [0, 32], sizes = [8, 32], strides = [1, 1]} : vector<8x128xf32> to vector<8x32xf32>
    %130 = vector.extract_strided_slice %127 {offsets = [0, 64], sizes = [8, 32], strides = [1, 1]} : vector<8x128xf32> to vector<8x32xf32>
    %131 = vector.extract_strided_slice %126 {offsets = [0, 96], sizes = [8, 32], strides = [1, 1]} : vector<8x128xf32> to vector<8x32xf32>
    %132 = arith.mulf %129, %108 : vector<8x32xf32>
    %133 = arith.mulf %128, %130 : vector<8x32xf32>
    %134 = arith.addf %132, %133 : vector<8x32xf32>
    %135 = math.tanh %134 : vector<8x32xf32>
    %136 = arith.mulf %131, %135 : vector<8x32xf32>
    %137 = arith.index_cast %115 : i32 to index
    %c0_44 = arith.constant 0 : index
    %138 = vector.load %arg5[%137, %c0_44] : memref<64x32xf32, #tpu.memory_space<vmem>>, vector<8x32xf32>
    tpu.vector_store %arg5[%137, %c0_44], %136 {strides = array<i32>} : memref<64x32xf32, #tpu.memory_space<vmem>>, vector<8x32xf32>,
    %139 = arith.truncf %136 : vector<8x32xf32> to vector<8x32xbf16>
    %c5_i32 = arith.constant 5 : i32
    %c8_i32_45 = arith.constant 8 : i32
    %140 = arith.muli %c5_i32, %c8_i32_45 : i32
    %141 = tpu.assume_multiple %140, 8 : i32
    %142 = arith.index_cast %141 : i32 to index
    %c0_46 = arith.constant 0 : index
    %143 = vector.load %arg6[%142, %c0_46] : memref<64x128xf32, #tpu.memory_space<vmem>>, vector<8x128xf32>
    %cst_47 = arith.constant dense<0.000000e+00> : vector<8x128xf32>
    %144 = tpu.matmul %139, %7, %cst_47 {dimension_numbers = #tpu.dot_dimension_numbers<[1], [0], [0], [1], [0, 0, 1, 1], [], []>} : vector<8x32xbf16>, vector<32x128xbf16>, vector<8x128xf32> -> vector<8x128xf32>
    %145 = arith.addf %143, %144 : vector<8x128xf32>
    %cst_48 = arith.constant 5.000000e-01 : f32
    %146 = vector.broadcast %cst_48 : f32 to vector<8x128xf32>
    %147 = arith.mulf %146, %145 : vector<8x128xf32>
    %148 = math.tanh %147 : vector<8x128xf32>
    %cst_49 = arith.constant 5.000000e-01 : f32
    %149 = vector.broadcast %cst_49 : f32 to vector<8x128xf32>
    %150 = arith.mulf %149, %148 : vector<8x128xf32>
    %cst_50 = arith.constant 5.000000e-01 : f32
    %151 = vector.broadcast %cst_50 : f32 to vector<8x128xf32>
    %152 = arith.addf %150, %151 : vector<8x128xf32>
    %153 = math.tanh %145 : vector<8x128xf32>
    %154 = vector.extract_strided_slice %152 {offsets = [0, 0], sizes = [8, 32], strides = [1, 1]} : vector<8x128xf32> to vector<8x32xf32>
    %155 = vector.extract_strided_slice %152 {offsets = [0, 32], sizes = [8, 32], strides = [1, 1]} : vector<8x128xf32> to vector<8x32xf32>
    %156 = vector.extract_strided_slice %153 {offsets = [0, 64], sizes = [8, 32], strides = [1, 1]} : vector<8x128xf32> to vector<8x32xf32>
    %157 = vector.extract_strided_slice %152 {offsets = [0, 96], sizes = [8, 32], strides = [1, 1]} : vector<8x128xf32> to vector<8x32xf32>
    %158 = arith.mulf %155, %134 : vector<8x32xf32>
    %159 = arith.mulf %154, %156 : vector<8x32xf32>
    %160 = arith.addf %158, %159 : vector<8x32xf32>
    %161 = math.tanh %160 : vector<8x32xf32>
    %162 = arith.mulf %157, %161 : vector<8x32xf32>
    %163 = arith.index_cast %141 : i32 to index
    %c0_51 = arith.constant 0 : index
    %164 = vector.load %arg5[%163, %c0_51] : memref<64x32xf32, #tpu.memory_space<vmem>>, vector<8x32xf32>
    tpu.vector_store %arg5[%163, %c0_51], %162 {strides = array<i32>} : memref<64x32xf32, #tpu.memory_space<vmem>>, vector<8x32xf32>,
    %165 = arith.truncf %162 : vector<8x32xf32> to vector<8x32xbf16>
    %c6_i32 = arith.constant 6 : i32
    %c8_i32_52 = arith.constant 8 : i32
    %166 = arith.muli %c6_i32, %c8_i32_52 : i32
    %167 = tpu.assume_multiple %166, 8 : i32
    %168 = arith.index_cast %167 : i32 to index
    %c0_53 = arith.constant 0 : index
    %169 = vector.load %arg6[%168, %c0_53] : memref<64x128xf32, #tpu.memory_space<vmem>>, vector<8x128xf32>
    %cst_54 = arith.constant dense<0.000000e+00> : vector<8x128xf32>
    %170 = tpu.matmul %165, %7, %cst_54 {dimension_numbers = #tpu.dot_dimension_numbers<[1], [0], [0], [1], [0, 0, 1, 1], [], []>} : vector<8x32xbf16>, vector<32x128xbf16>, vector<8x128xf32> -> vector<8x128xf32>
    %171 = arith.addf %169, %170 : vector<8x128xf32>
    %cst_55 = arith.constant 5.000000e-01 : f32
    %172 = vector.broadcast %cst_55 : f32 to vector<8x128xf32>
    %173 = arith.mulf %172, %171 : vector<8x128xf32>
    %174 = math.tanh %173 : vector<8x128xf32>
    %cst_56 = arith.constant 5.000000e-01 : f32
    %175 = vector.broadcast %cst_56 : f32 to vector<8x128xf32>
    %176 = arith.mulf %175, %174 : vector<8x128xf32>
    %cst_57 = arith.constant 5.000000e-01 : f32
    %177 = vector.broadcast %cst_57 : f32 to vector<8x128xf32>
    %178 = arith.addf %176, %177 : vector<8x128xf32>
    %179 = math.tanh %171 : vector<8x128xf32>
    %180 = vector.extract_strided_slice %178 {offsets = [0, 0], sizes = [8, 32], strides = [1, 1]} : vector<8x128xf32> to vector<8x32xf32>
    %181 = vector.extract_strided_slice %178 {offsets = [0, 32], sizes = [8, 32], strides = [1, 1]} : vector<8x128xf32> to vector<8x32xf32>
    %182 = vector.extract_strided_slice %179 {offsets = [0, 64], sizes = [8, 32], strides = [1, 1]} : vector<8x128xf32> to vector<8x32xf32>
    %183 = vector.extract_strided_slice %178 {offsets = [0, 96], sizes = [8, 32], strides = [1, 1]} : vector<8x128xf32> to vector<8x32xf32>
    %184 = arith.mulf %181, %160 : vector<8x32xf32>
    %185 = arith.mulf %180, %182 : vector<8x32xf32>
    %186 = arith.addf %184, %185 : vector<8x32xf32>
    %187 = math.tanh %186 : vector<8x32xf32>
    %188 = arith.mulf %183, %187 : vector<8x32xf32>
    %189 = arith.index_cast %167 : i32 to index
    %c0_58 = arith.constant 0 : index
    %190 = vector.load %arg5[%189, %c0_58] : memref<64x32xf32, #tpu.memory_space<vmem>>, vector<8x32xf32>
    tpu.vector_store %arg5[%189, %c0_58], %188 {strides = array<i32>} : memref<64x32xf32, #tpu.memory_space<vmem>>, vector<8x32xf32>,
    %191 = arith.truncf %188 : vector<8x32xf32> to vector<8x32xbf16>
    %c7_i32 = arith.constant 7 : i32
    %c8_i32_59 = arith.constant 8 : i32
    %192 = arith.muli %c7_i32, %c8_i32_59 : i32
    %193 = tpu.assume_multiple %192, 8 : i32
    %194 = arith.index_cast %193 : i32 to index
    %c0_60 = arith.constant 0 : index
    %195 = vector.load %arg6[%194, %c0_60] : memref<64x128xf32, #tpu.memory_space<vmem>>, vector<8x128xf32>
    %cst_61 = arith.constant dense<0.000000e+00> : vector<8x128xf32>
    %196 = tpu.matmul %191, %7, %cst_61 {dimension_numbers = #tpu.dot_dimension_numbers<[1], [0], [0], [1], [0, 0, 1, 1], [], []>} : vector<8x32xbf16>, vector<32x128xbf16>, vector<8x128xf32> -> vector<8x128xf32>
    %197 = arith.addf %195, %196 : vector<8x128xf32>
    %cst_62 = arith.constant 5.000000e-01 : f32
    %198 = vector.broadcast %cst_62 : f32 to vector<8x128xf32>
    %199 = arith.mulf %198, %197 : vector<8x128xf32>
    %200 = math.tanh %199 : vector<8x128xf32>
    %cst_63 = arith.constant 5.000000e-01 : f32
    %201 = vector.broadcast %cst_63 : f32 to vector<8x128xf32>
    %202 = arith.mulf %201, %200 : vector<8x128xf32>
    %cst_64 = arith.constant 5.000000e-01 : f32
    %203 = vector.broadcast %cst_64 : f32 to vector<8x128xf32>
    %204 = arith.addf %202, %203 : vector<8x128xf32>
    %205 = math.tanh %197 : vector<8x128xf32>
    %206 = vector.extract_strided_slice %204 {offsets = [0, 0], sizes = [8, 32], strides = [1, 1]} : vector<8x128xf32> to vector<8x32xf32>
    %207 = vector.extract_strided_slice %204 {offsets = [0, 32], sizes = [8, 32], strides = [1, 1]} : vector<8x128xf32> to vector<8x32xf32>
    %208 = vector.extract_strided_slice %205 {offsets = [0, 64], sizes = [8, 32], strides = [1, 1]} : vector<8x128xf32> to vector<8x32xf32>
    %209 = vector.extract_strided_slice %204 {offsets = [0, 96], sizes = [8, 32], strides = [1, 1]} : vector<8x128xf32> to vector<8x32xf32>
    %210 = arith.mulf %207, %186 : vector<8x32xf32>
    %211 = arith.mulf %206, %208 : vector<8x32xf32>
    %212 = arith.addf %210, %211 : vector<8x32xf32>
    %213 = math.tanh %212 : vector<8x32xf32>
    %214 = arith.mulf %209, %213 : vector<8x32xf32>
    %215 = arith.index_cast %193 : i32 to index
    %c0_65 = arith.constant 0 : index
    %216 = vector.load %arg5[%215, %c0_65] : memref<64x32xf32, #tpu.memory_space<vmem>>, vector<8x32xf32>
    tpu.vector_store %arg5[%215, %c0_65], %214 {strides = array<i32>} : memref<64x32xf32, #tpu.memory_space<vmem>>, vector<8x32xf32>,
    %217 = arith.truncf %214 : vector<8x32xf32> to vector<8x32xbf16>
    %c8_i32_66 = arith.constant 8 : i32
    return
  }
  func.func @transform_0(%arg0: i32) -> (i32, i32) {
    %c0_i32 = arith.constant 0 : i32
    %c0_i32_0 = arith.constant 0 : i32
    %c0_i32_1 = arith.constant 0 : i32
    return %c0_i32, %c0_i32_0 : i32, i32
  }
  func.func @transform_1(%arg0: i32) -> (i32, i32) {
    %c0_i32 = arith.constant 0 : i32
    %c0_i32_0 = arith.constant 0 : i32
    %c0_i32_1 = arith.constant 0 : i32
    return %c0_i32, %c0_i32_0 : i32, i32
  }
  func.func @transform_2(%arg0: i32) -> (i32, i32) {
    %c0_i32 = arith.constant 0 : i32
    %c0_i32_0 = arith.constant 0 : i32
    %c0_i32_1 = arith.constant 0 : i32
    return %c0_i32, %c0_i32_0 : i32, i32
  }
  func.func @transform_3(%arg0: i32) -> (i32, i32) {
    %c0_i32 = arith.constant 0 : i32
    %c0_i32_0 = arith.constant 0 : i32
    %c0_i32_1 = arith.constant 0 : i32
    return %c0_i32, %c0_i32_0 : i32, i32
  }
  func.func @transform_4(%arg0: i32) -> (i32, i32) {
    %c0_i32 = arith.constant 0 : i32
    %c0_i32_0 = arith.constant 0 : i32
    %c0_i32_1 = arith.constant 0 : i32
    return %c0_i32, %c0_i32_0 : i32, i32
  }
}

</mosaic_0001>

<bundles_post_ra>
// kernel: tpu_custom_call.1
= control target key start
LH: loop header
LB: loop body
LE: loop exit
PB: predicated region body
PF: predicated region fallthrough
CT: control target
= control target key end

     0   :  { %v975_v0 = vmov 0.0   ;;  %vm976_vm0 = vmmov 0   ;;  %vm61_vm1 = vcmask 130048   ;;  %v977_v6 = vmov 0   ;;  %s978_s25 = smov 64   ;;  %s1221_s1 = inlined_call_operand.vmem [shape: bf16[16,128], index: 1, kind: input, shape index: {}]   ;;  %s1222_s2 = inlined_call_operand.vmem [shape: bf16[32,128], index: 2, kind: input, shape index: {}]   ;;  %s1223_s0 = inlined_call_operand.vmem [shape: bf16[64,16], index: 0, kind: input, shape index: {}]   ;;  %s1224_s3 = inlined_call_operand.vmem [shape: f32[1,128], index: 3, kind: input, shape index: {}]   ;;  %s1225_s4 = inlined_call_operand.vmem [shape: f32[64,32], index: 4, kind: output, shape index: {}]  }
   0x1   :  { %851 = vmatprep.subr.bf16.mxu1 %v975_v0  ;;  %v920_v1 = vld [vmem:[%s1221_s1] sm:$0xff]   ;;  %855 = vmatprep.mubr.msk.bf16.mxu1 %vm976_vm0, %v975_v0  ;;  %v1014_v2 = vld [vmem:[%s1222_s2 + $0x8] sm:$0xff]   ;;  %vm164_vm2 = vcmask 261120   ;;  %v925_v49 = vld [vmem:[%s1223_s0 + $0x10] sm:$0xff]  }
   0x2   :  { %841 = vmatprep.subr.bf16.mxu0 %v920_v1  ;;  %v922_v3 = vld [vmem:[%s1223_s0] sm:$0xff]   ;;  %852 = vmatpush3.bf16.msra.mxu1 %v1014_v2  ;;  %v923_v4 = vld [vmem:[%s1223_s0 + $0x8] sm:$0xff]   ;;  %v926_v50 = vld [vmem:[%s1223_s0 + $0x18] sm:$0xff]  }
   0x3   :  { %842 = vmatpush3.bf16.msra.mxu0 %v920_v1  ;;  %843 = vmatprep.mubr.msk.bf16.mxu0 %vm61_vm1, %v922_v3  ;;  %v1028_v5 = vld [vmem:[%s1222_s2] sm:$0xff]  }
   0x4   :  { %853 = vmatprep.subr.bf16.mxu1 %v975_v0  ;;  %867 = vmatprep.subr.bf16.mxu0 %v975_v0  ;;  %v1049_v8 = vld [vmem:[%s1224_s3] ss:$0 sm:$0xff]  ;;  %s979_s3 = smov 32  }
   0x6   :  { %844 = vmatmul.mubr.msk.bf16.vlgmr.msra.gmra.mxu0 %vm61_vm1, %v923_v4  ;;  %854 = vmatpush3.bf16.msra.mxu1 %v1028_v5 }
   0x7   :  { %868 = vmatpush3.bf16.msra.mxu0 %v1014_v2  ;;  %859 = vmatprep.subr.bf16.mxu1 %v975_v0 }
   0x8   :  { %869 = vmatprep.subr.bf16.mxu0 %v975_v0  ;;  %847 = vmatprep.mubr.msk.bf16.mxu0 %vm61_vm1, %v925_v49 }
   0x9   :  { %856 = vmatmul.mubr.bf16.vlgmr.msra.gmra.mxu1 %v977_v6 }
   0xa   :  { %860 = vmatpush3.bf16.msra.mxu1 %v1014_v2  ;;  %863 = vmatprep.mubr.msk.bf16.mxu1 %vm976_vm0, %v975_v0 }
   0xb   :  { %861 = vmatprep.subr.bf16.mxu1 %v975_v0  ;;  %870 = vmatpush3.bf16.msra.mxu0 %v1028_v5 }
   0xc   :  { %883 = vmatprep.subr.bf16.mxu0 %v975_v0 }
   0xe   :  { %862 = vmatpush3.bf16.msra.mxu1 %v1028_v5  ;;  %848 = vmatmul.mubr.msk.bf16.gmra.mxu0 %vm61_vm1, %v926_v50 }
   0xf   :  { %875 = vmatprep.subr.bf16.mxu1 %v975_v0  ;;  %871 = vmatprep.mubr.msk.bf16.mxu0 %vm976_vm0, %v975_v0 }
  0xc6   :  { %v1044_v7 = vpop.f32.mrf.mxu0 }
  0xc7   :  { %v117_v60 = vadd.f32 %v1044_v7, %v1049_v8 }
  0xc8   :  { %v108_v9 = vpop.f32.mrf.mxu0 }
  0xc9   :  { %v109_v10 = vadd.f32 %v1049_v8, %v108_v9  ;;  %v202_v11 = vpop.f32.mrf.mxu1 }
  0xca   :  { %v1067_v31 = vpop.f32.mrf.mxu0 }
  0xcb   :  { %v208_v12 = vadd.f32 %v202_v11, %v109_v10  ;;  %v857_v13 = vpop.f32.mrf.mxu1 }
  0xcc   :  { %v111_v32 = vpop.f32.mrf.mxu0 }
  0xcd   :  { %927 = vtanh.f32 %v208_v12  ;;  %v205_v14 = vpop.f32.mrf.mxu1  ;;  %v209_v17 = vmul.f32 0.5, %v208_v12  ;;  %v112_v33 = vadd.f32 %v1049_v8, %v111_v32 }
  0xce   :  { %v1095_v56 = vpop.f32.mrf.mxu0 }
  0xcf   :  { %v858_v15 = vpop.f32.mrf.mxu1  ;;  %929 = vtanh.f32 %v209_v17 }
  0xd0   :  { %v1097_v57 = vpop.f32.mrf.mxu0 }
  0xd2   :  { %v1099_v58 = vpop.f32.mrf.mxu0 }
  0xd4   :  { %v1101_v59 = vpop.f32.mrf.mxu0 }
  0xda   :  { %v928_v16 = vpop.eup %927 }
  0xdb   :  { %216 = vrot.lane.b32.xlu0 %v928_v16, %s978_s25 }
  0xdc   :  { %v930_v18 = vpop.eup %929 }
  0xdd   :  { %v211_v19 = vmul.f32 0.5, %v930_v18 }
  0xdf   :  { %v212_v20 = vadd.f32 0.5, %v211_v19 }
  0xe1   :  { %v214_v23 = vmul.f32 0.0, %v212_v20 }
 0x14d   :  { %v217_v21 = vpop.permute.xlu0 %216 }
 0x14e   :  { %v219_v22 = vmul.f32 %v217_v21, %v212_v20  ;;  %v120_v21 = vadd.f32 %v1067_v31, %v1049_v8 }
 0x150   :  { %221 = vrot.lane.b32.xlu0 %v219_v22, %s979_s3 }
 0x1c2   :  { %v222_v24 = vpop.permute.xlu0 %221 }
 0x1c3   :  { %v224_v25 = vadd.f32 %v222_v24, %v214_v23 }
 0x1c5   :  { %931 = vtanh.f32 %v224_v25 }
 0x1d2   :  { %v932_v26 = vpop.eup %931 }
 0x1d3   :  { %227 = vrot.lane.b32.xlu1 %v932_v26, %s978_s25 }
 0x245   :  { %v228_v27 = vpop.permute.xlu1 %227 }
 0x246   :  { %v1055_v28 = vmul.f32 %v228_v27, %v212_v20 }
 0x248   :  { %v236_v29 = vpack.c.bf16 %v1055_v28, %v1055_v28 }
 0x24a   :  { %240 = vrot.lane.b32.xlu1 %v236_v29, %s979_s3 }
 0x2bc   :  { %v241_v30 = vpop.permute.xlu1 %240 }
 0x2bd   :  { %864 = vmatmul.mubr.msk.bf16.vlgmr.msra.gmra.mxu1 %vm164_vm2, %v241_v30 }
 0x2be   :  { %876 = vmatpush3.bf16.msra.mxu1 %v1014_v2  ;;  %879 = vmatprep.mubr.msk.bf16.mxu1 %vm976_vm0, %v975_v0 }
 0x2bf   :  { %877 = vmatprep.subr.bf16.mxu1 %v975_v0 }
 0x2c2   :  { %878 = vmatpush3.bf16.msra.mxu1 %v1028_v5 }
 0x2c3   :  { %891 = vmatprep.subr.bf16.mxu1 %v975_v0 }
 0x37d   :  { %v279_v34 = vpop.f32.mrf.mxu1 }
 0x37e   :  { %v285_v35 = vadd.f32 %v279_v34, %v112_v33 }
 0x37f   :  { %v865_v36 = vpop.f32.mrf.mxu1 }
 0x380   :  { %933 = vtanh.f32 %v285_v35  ;;  %v286_v40 = vmul.f32 0.5, %v285_v35 }
 0x381   :  { %v282_v37 = vpop.f32.mrf.mxu1 }
 0x382   :  { %935 = vtanh.f32 %v286_v40 }
 0x383   :  { %v866_v38 = vpop.f32.mrf.mxu1 }
 0x38d   :  { %v934_v39 = vpop.eup %933 }
 0x38e   :  { %293 = vrot.lane.b32.xlu0 %v934_v39, %s978_s25 }
 0x38f   :  { %v936_v41 = vpop.eup %935 }
 0x390   :  { %v288_v42 = vmul.f32 0.5, %v936_v41 }
 0x392   :  { %v289_v43 = vadd.f32 0.5, %v288_v42 }
 0x394   :  { %v291_v46 = vmul.f32 %v289_v43, %v224_v25 }
 0x400   :  { %v294_v44 = vpop.permute.xlu0 %293 }
 0x401   :  { %v296_v45 = vmul.f32 %v294_v44, %v289_v43 }
 0x403   :  { %298 = vrot.lane.b32.xlu1 %v296_v45, %s979_s3 }
 0x475   :  { %v299_v47 = vpop.permute.xlu1 %298 }
 0x476   :  { %v301_v48 = vadd.f32 %v299_v47, %v291_v46 }
 0x478   :  { %937 = vtanh.f32 %v301_v48 }
 0x485   :  { %v938_v51 = vpop.eup %937 }
 0x486   :  { %304 = vrot.lane.b32.xlu0 %v938_v51, %s978_s25 }
 0x4f8   :  { %v305_v52 = vpop.permute.xlu0 %304 }
 0x4f9   :  { %v1083_v53 = vmul.f32 %v305_v52, %v289_v43  ;;  %v125_v43 = vadd.f32 %v1049_v8, %v1097_v57 }
 0x4fb   :  { %v314_v54 = vpack.c.bf16 %v1083_v53, %v1083_v53 }
 0x4fd   :  { %318 = vrot.lane.b32.xlu1 %v314_v54, %s979_s3 }
 0x56f   :  { %v319_v55 = vpop.permute.xlu1 %318 }
 0x570   :  { %872 = vmatmul.mubr.msk.bf16.vlgmr.msra.gmra.mxu0 %vm164_vm2, %v319_v55 }
 0x571   :  { %884 = vmatpush3.bf16.msra.mxu0 %v1014_v2  ;;  %887 = vmatprep.mubr.msk.bf16.mxu0 %vm976_vm0, %v975_v0 }
 0x572   :  { %885 = vmatprep.subr.bf16.mxu0 %v975_v0 }
 0x575   :  { %886 = vmatpush3.bf16.msra.mxu0 %v1028_v5 }
 0x576   :  { %899 = vmatprep.subr.bf16.mxu0 %v975_v0 }
 0x630   :  { %v357_v61 = vpop.f32.mrf.mxu0 }
 0x631   :  { %v363_v62 = vadd.f32 %v357_v61, %v117_v60 }
 0x632   :  { %v873_v63 = vpop.f32.mrf.mxu0 }
 0x633   :  { %939 = vtanh.f32 %v363_v62  ;;  %v364_v6 = vmul.f32 0.5, %v363_v62 }
 0x634   :  { %v360_v1 = vpop.f32.mrf.mxu0 }
 0x635   :  { %941 = vtanh.f32 %v364_v6 }
 0x636   :  { %v874_v3 = vpop.f32.mrf.mxu0 }
 0x640   :  { %v940_v4 = vpop.eup %939 }
 0x641   :  { %371 = vrot.lane.b32.xlu0 %v940_v4, %s978_s25 }
 0x642   :  { %v942_v9 = vpop.eup %941 }
 0x643   :  { %v366_v10 = vmul.f32 0.5, %v942_v9  ;;  %v128_v9 = vadd.f32 %v1049_v8, %v1101_v59 }
 0x645   :  { %v367_v11 = vadd.f32 0.5, %v366_v10 }
 0x647   :  { %v369_v14 = vmul.f32 %v367_v11, %v301_v48 }
 0x6b3   :  { %v372_v12 = vpop.permute.xlu0 %371 }
 0x6b4   :  { %v374_v13 = vmul.f32 %v372_v12, %v367_v11 }
 0x6b6   :  { %376 = vrot.lane.b32.xlu1 %v374_v13, %s979_s3 }
 0x728   :  { %v377_v7 = vpop.permute.xlu1 %376 }
 0x729   :  { %v379_v15 = vadd.f32 %v377_v7, %v369_v14 }
 0x72b   :  { %943 = vtanh.f32 %v379_v15 }
 0x738   :  { %v944_v16 = vpop.eup %943 }
 0x739   :  { %382 = vrot.lane.b32.xlu0 %v944_v16, %s978_s25 }
 0x7ab   :  { %v383_v17 = vpop.permute.xlu0 %382 }
 0x7ac   :  { %v1108_v18 = vmul.f32 %v383_v17, %v367_v11 }
 0x7ae   :  { %v392_v19 = vpack.c.bf16 %v1108_v18, %v1108_v18 }
 0x7b0   :  { %396 = vrot.lane.b32.xlu1 %v392_v19, %s979_s3 }
 0x822   :  { %v397_v20 = vpop.permute.xlu1 %396 }
 0x823   :  { %880 = vmatmul.mubr.msk.bf16.vlgmr.msra.gmra.mxu1 %vm164_vm2, %v397_v20 }
 0x824   :  { %892 = vmatpush3.bf16.msra.mxu1 %v1014_v2  ;;  %895 = vmatprep.mubr.msk.bf16.mxu1 %vm976_vm0, %v975_v0 }
 0x825   :  { %893 = vmatprep.subr.bf16.mxu1 %v975_v0 }
 0x828   :  { %894 = vmatpush3.bf16.msra.mxu1 %v1028_v5 }
 0x829   :  { %907 = vmatprep.subr.bf16.mxu1 %v975_v0 }
 0x8e3   :  { %v435_v22 = vpop.f32.mrf.mxu1 }
 0x8e4   :  { %v441_v23 = vadd.f32 %v435_v22, %v120_v21 }
 0x8e5   :  { %v881_v24 = vpop.f32.mrf.mxu1 }
 0x8e6   :  { %945 = vtanh.f32 %v441_v23  ;;  %v442_v29 = vmul.f32 0.5, %v441_v23 }
 0x8e7   :  { %v438_v25 = vpop.f32.mrf.mxu1 }
 0x8e8   :  { %947 = vtanh.f32 %v442_v29 }
 0x8e9   :  { %v882_v26 = vpop.f32.mrf.mxu1 }
 0x8ea   :  { %v133_v26 = vadd.f32 %v1095_v56, %v1049_v8 }
 0x8f3   :  { %v946_v27 = vpop.eup %945 }
 0x8f4   :  { %449 = vrot.lane.b32.xlu0 %v946_v27, %s978_s25 }
 0x8f5   :  { %v948_v30 = vpop.eup %947 }
 0x8f6   :  { %v444_v32 = vmul.f32 0.5, %v948_v30 }
 0x8f8   :  { %v445_v33 = vadd.f32 0.5, %v444_v32 }
 0x8fa   :  { %v447_v36 = vmul.f32 %v445_v33, %v379_v15 }
 0x966   :  { %v450_v34 = vpop.permute.xlu0 %449 }
 0x967   :  { %v452_v35 = vmul.f32 %v450_v34, %v445_v33 }
 0x969   :  { %454 = vrot.lane.b32.xlu1 %v452_v35, %s979_s3 }
 0x9db   :  { %v455_v31 = vpop.permute.xlu1 %454 }
 0x9dc   :  { %v457_v37 = vadd.f32 %v455_v31, %v447_v36 }
 0x9de   :  { %949 = vtanh.f32 %v457_v37 }
 0x9eb   :  { %v950_v38 = vpop.eup %949 }
 0x9ec   :  { %460 = vrot.lane.b32.xlu0 %v950_v38, %s978_s25 }
 0xa5e   :  { %v461_v39 = vpop.permute.xlu0 %460 }
 0xa5f   :  { %v1125_v40 = vmul.f32 %v461_v39, %v445_v33 }
 0xa61   :  { %v470_v41 = vpack.c.bf16 %v1125_v40, %v1125_v40 }
 0xa63   :  { %474 = vrot.lane.b32.xlu1 %v470_v41, %s979_s3 }
 0xad5   :  { %v475_v42 = vpop.permute.xlu1 %474 }
 0xad6   :  { %888 = vmatmul.mubr.msk.bf16.vlgmr.msra.gmra.mxu0 %vm164_vm2, %v475_v42 }
 0xad7   :  { %900 = vmatpush3.bf16.msra.mxu0 %v1014_v2  ;;  %903 = vmatprep.mubr.msk.bf16.mxu0 %vm976_vm0, %v975_v0 }
 0xad8   :  { %901 = vmatprep.subr.bf16.mxu0 %v975_v0 }
 0xadb   :  { %902 = vmatpush3.bf16.msra.mxu0 %v1028_v5 }
 0xb96   :  { %v513_v44 = vpop.f32.mrf.mxu0 }
 0xb97   :  { %v519_v45 = vadd.f32 %v513_v44, %v125_v43 }
 0xb98   :  { %v889_v46 = vpop.f32.mrf.mxu0 }
 0xb99   :  { %951 = vtanh.f32 %v519_v45  ;;  %v520_v50 = vmul.f32 0.5, %v519_v45 }
 0xb9a   :  { %v516_v47 = vpop.f32.mrf.mxu0 }
 0xb9b   :  { %953 = vtanh.f32 %v520_v50 }
 0xb9c   :  { %v890_v48 = vpop.f32.mrf.mxu0 }
 0xb9d   :  { %v136_v48 = vadd.f32 %v1099_v58, %v1049_v8 }
 0xba6   :  { %v952_v49 = vpop.eup %951 }
 0xba7   :  { %527 = vrot.lane.b32.xlu0 %v952_v49, %s978_s25 }
 0xba8   :  { %v954_v51 = vpop.eup %953 }
 0xba9   :  { %v522_v52 = vmul.f32 0.5, %v954_v51 }
 0xbab   :  { %v523_v54 = vadd.f32 0.5, %v522_v52 }
 0xbad   :  { %v525_v61 = vmul.f32 %v523_v54, %v457_v37 }
 0xc19   :  { %v528_v55 = vpop.permute.xlu0 %527 }
 0xc1a   :  { %v530_v60 = vmul.f32 %v528_v55, %v523_v54 }
 0xc1c   :  { %532 = vrot.lane.b32.xlu1 %v530_v60, %s979_s3 }
 0xc8e   :  { %v533_v57 = vpop.permute.xlu1 %532 }
 0xc8f   :  { %v535_v62 = vadd.f32 %v533_v57, %v525_v61 }
 0xc91   :  { %955 = vtanh.f32 %v535_v62 }
 0xc9e   :  { %v956_v63 = vpop.eup %955 }
 0xc9f   :  { %538 = vrot.lane.b32.xlu0 %v956_v63, %s978_s25 }
 0xd11   :  { %v539_v1 = vpop.permute.xlu0 %538 }
 0xd12   :  { %v1141_v3 = vmul.f32 %v539_v1, %v523_v54 }
 0xd14   :  { %v548_v4 = vpack.c.bf16 %v1141_v3, %v1141_v3 }
 0xd16   :  { %552 = vrot.lane.b32.xlu1 %v548_v4, %s979_s3 }
 0xd88   :  { %v553_v6 = vpop.permute.xlu1 %552 }
 0xd89   :  { %896 = vmatmul.mubr.msk.bf16.vlgmr.msra.gmra.mxu1 %vm164_vm2, %v553_v6 }
 0xd8a   :  { %908 = vmatpush3.bf16.msra.mxu1 %v1014_v2  ;;  %911 = vmatprep.mubr.msk.bf16.mxu1 %vm976_vm0, %v975_v0 }
 0xd8b   :  { %909 = vmatprep.subr.bf16.mxu1 %v975_v0 }
 0xd8e   :  { %910 = vmatpush3.bf16.msra.mxu1 %v1028_v5 }
 0xe49   :  { %v591_v10 = vpop.f32.mrf.mxu1 }
 0xe4a   :  { %v597_v11 = vadd.f32 %v591_v10, %v128_v9 }
 0xe4b   :  { %v897_v12 = vpop.f32.mrf.mxu1 }
 0xe4c   :  { %957 = vtanh.f32 %v597_v11  ;;  %v598_v2 = vmul.f32 0.5, %v597_v11 }
 0xe4d   :  { %v594_v13 = vpop.f32.mrf.mxu1 }
 0xe4e   :  { %959 = vtanh.f32 %v598_v2 }
 0xe4f   :  { %v898_v14 = vpop.f32.mrf.mxu1 }
 0xe59   :  { %v958_v7 = vpop.eup %957 }
 0xe5a   :  { %605 = vrot.lane.b32.xlu0 %v958_v7, %s978_s25 }
 0xe5b   :  { %v960_v15 = vpop.eup %959 }
 0xe5c   :  { %v600_v16 = vmul.f32 0.5, %v960_v15 }
 0xe5e   :  { %v601_v17 = vadd.f32 0.5, %v600_v16 }
 0xe60   :  { %v603_v5 = vmul.f32 %v601_v17, %v535_v62 }
 0xecc   :  { %v606_v0 = vpop.permute.xlu0 %605 }
 0xecd   :  { %v608_v19 = vmul.f32 %v606_v0, %v601_v17 }
 0xecf   :  { %610 = vrot.lane.b32.xlu1 %v608_v19, %s979_s3 }
 0xf41   :  { %v611_v59 = vpop.permute.xlu1 %610 }
 0xf42   :  { %v613_v20 = vadd.f32 %v611_v59, %v603_v5 }
 0xf44   :  { %961 = vtanh.f32 %v613_v20 }
 0xf51   :  { %v962_v21 = vpop.eup %961 }
 0xf52   :  { %616 = vrot.lane.b32.xlu0 %v962_v21, %s978_s25 }
 0xfc4   :  { %v617_v22 = vpop.permute.xlu0 %616 }
 0xfc5   :  { %v1157_v23 = vmul.f32 %v617_v22, %v601_v17 }
 0xfc7   :  { %v626_v24 = vpack.c.bf16 %v1157_v23, %v1157_v23 }
 0xfc9   :  { %630 = vrot.lane.b32.xlu1 %v626_v24, %s979_s3 }
0x103b   :  { %v631_v25 = vpop.permute.xlu1 %630 }
0x103c   :  { %904 = vmatmul.mubr.msk.bf16.vlgmr.msra.gmra.mxu0 %vm164_vm2, %v631_v25 }
0x10fc   :  { %v669_v27 = vpop.f32.mrf.mxu0 }
0x10fd   :  { %v675_v29 = vadd.f32 %v669_v27, %v133_v26 }
0x10fe   :  { %v905_v30 = vpop.f32.mrf.mxu0 }
0x10ff   :  { %963 = vtanh.f32 %v675_v29  ;;  %v676_v35 = vmul.f32 0.5, %v675_v29 }
0x1100   :  { %v672_v32 = vpop.f32.mrf.mxu0 }
0x1101   :  { %965 = vtanh.f32 %v676_v35 }
0x1102   :  { %v906_v33 = vpop.f32.mrf.mxu0 }
0x110c   :  { %v964_v34 = vpop.eup %963 }
0x110d   :  { %683 = vrot.lane.b32.xlu0 %v964_v34, %s978_s25 }
0x110e   :  { %v966_v36 = vpop.eup %965 }
0x110f   :  { %v678_v31 = vmul.f32 0.5, %v966_v36 }
0x1111   :  { %v679_v37 = vadd.f32 0.5, %v678_v31 }
0x1113   :  { %v681_v41 = vmul.f32 %v679_v37, %v613_v20 }
0x117f   :  { %v684_v38 = vpop.permute.xlu0 %683 }
0x1180   :  { %v686_v39 = vmul.f32 %v684_v38, %v679_v37 }
0x1182   :  { %688 = vrot.lane.b32.xlu1 %v686_v39, %s979_s3 }
0x11f4   :  { %v689_v56 = vpop.permute.xlu1 %688 }
0x11f5   :  { %v691_v42 = vadd.f32 %v689_v56, %v681_v41 }
0x11f7   :  { %967 = vtanh.f32 %v691_v42 }
0x1204   :  { %v968_v43 = vpop.eup %967 }
0x1205   :  { %694 = vrot.lane.b32.xlu0 %v968_v43, %s978_s25 }
0x1277   :  { %v695_v44 = vpop.permute.xlu0 %694 }
0x1278   :  { %v697_v45 = vmul.f32 %v695_v44, %v679_v37 }
0x127a   :  { %v704_v46 = vpack.c.bf16 %v697_v45, %v697_v45 }
0x127c   :  { %708 = vrot.lane.b32.xlu1 %v704_v46, %s979_s3 }
0x12ee   :  { %v709_v47 = vpop.permute.xlu1 %708 }
0x12ef   :  { %912 = vmatmul.mubr.msk.bf16.vlgmr.msra.gmra.mxu1 %vm164_vm2, %v709_v47 }
0x13af   :  { %v747_v49 = vpop.f32.mrf.mxu1 }
0x13b0   :  { %v753_v50 = vadd.f32 %v747_v49, %v136_v48 }
0x13b1   :  { %v913_v51 = vpop.f32.mrf.mxu1 }
0x13b2   :  { %969 = vtanh.f32 %v753_v50  ;;  %v754_v60 = vmul.f32 0.5, %v753_v50 }
0x13b3   :  { %v750_v52 = vpop.f32.mrf.mxu1 }
0x13b4   :  { %971 = vtanh.f32 %v754_v60 }
0x13b5   :  { %v914_v54 = vpop.f32.mrf.mxu1 }
0x13bf   :  { %v970_v55 = vpop.eup %969 }
0x13c0   :  { %761 = vrot.lane.b32.xlu0 %v970_v55, %s978_s25 }
0x13c1   :  { %v972_v61 = vpop.eup %971 }
0x13c2   :  { %v756_v57 = vmul.f32 0.5, %v972_v61 }
0x13c4   :  { %v757_v62 = vadd.f32 0.5, %v756_v57 }
0x13c6   :  { %v759_v8 = vmul.f32 %v757_v62, %v691_v42 }
0x1432   :  { %v762_v63 = vpop.permute.xlu0 %761 }
0x1433   :  { %v764_v1 = vmul.f32 %v762_v63, %v757_v62 }
0x1435   :  { %766 = vrot.lane.b32.xlu1 %v764_v1, %s979_s3 }
0x1439   :  { %232 = vrot.lane.b32.xlu1 %v1055_v28, %s979_s3 }
0x143d   :  { %387 = vrot.lane.b32.xlu1 %v1108_v18, %s979_s3 }
0x1441   :  { %543 = vrot.lane.b32.xlu1 %v1141_v3, %s979_s3 }
0x1445   :  { %699 = vrot.lane.b32.xlu1 %v697_v45, %s979_s3 }
0x14a7   :  { %v767_v58 = vpop.permute.xlu1 %766 }
0x14a8   :  { %v769_v4 = vadd.f32 %v767_v58, %v759_v8 }
0x14aa   :  { %973 = vtanh.f32 %v769_v4 }
0x14ab   :  { %v233_v6 = vpop.permute.xlu1 %232 }
0x14ac   :  { %235 = vst.msk [vmem:[%s1225_s4] sm:$0xff] %vm164_vm2, %v233_v6 }
0x14af   :  { %v388_v9 = vpop.permute.xlu1 %387 }
0x14b0   :  { %801 = vst.msk [vmem:[%s1225_s4 + $0x10] sm:$0xff] %vm164_vm2, %v388_v9 }
0x14b3   :  { %v544_v28 = vpop.permute.xlu1 %543 }
0x14b4   :  { %805 = vst.msk [vmem:[%s1225_s4 + $0x20] sm:$0xff] %vm164_vm2, %v544_v28 }
0x14b7   :  { %v974_v18 = vpop.eup %973  ;;  %v700_v3 = vpop.permute.xlu1 %699 }
0x14b8   :  { %809 = vst.msk [vmem:[%s1225_s4 + $0x30] sm:$0xff] %vm164_vm2, %v700_v3  ;;  %772 = vrot.lane.b32.xlu0 %v974_v18, %s978_s25 }
0x14bc   :  { %309 = vrot.lane.b32.xlu0 %v1083_v53, %s979_s3 }
0x14c0   :  { %465 = vrot.lane.b32.xlu0 %v1125_v40, %s979_s3 }
0x14c4   :  { %621 = vrot.lane.b32.xlu0 %v1157_v23, %s979_s3 }
0x152a   :  { %v773_v10 = vpop.permute.xlu0 %772 }
0x152b   :  { %v775_v11 = vmul.f32 %v773_v10, %v757_v62 }
0x152d   :  { %777 = vrot.lane.b32.xlu0 %v775_v11, %s979_s3 }
0x152e   :  { %v310_v12 = vpop.permute.xlu0 %309 }
0x152f   :  { %799 = vst.msk [vmem:[%s1225_s4 + $0x8] sm:$0xff] %vm164_vm2, %v310_v12 }
0x1532   :  { %v466_v13 = vpop.permute.xlu0 %465 }
0x1533   :  { %803 = vst.msk [vmem:[%s1225_s4 + $0x18] sm:$0xff] %vm164_vm2, %v466_v13 }
0x1536   :  { %v622_v53 = vpop.permute.xlu0 %621 }
0x1537   :  { %807 = vst.msk [vmem:[%s1225_s4 + $0x28] sm:$0xff] %vm164_vm2, %v622_v53 }
0x159f   :  { %v778_v40 = vpop.permute.xlu0 %777 }
0x15a0   :  { %811 = vst.msk [vmem:[%s1225_s4 + $0x38] sm:$0xff] %vm164_vm2, %v778_v40 }

</bundles_post_ra>
